<compile_context>
chip_gen: v5e
topology: v5e:2x2
jax: 0.10.0
libtpu: 0.0.40
codegen_flags: <defaults>
</compile_context>

<pallas_src>
import functools
import math

import jax
import jax.numpy as jnp
from jax.experimental import pallas as pl
from jax.experimental.pallas import tpu as pltpu


# ---------------------------------------------------------------------------
# Fixed sinusoidal positional-encoding table (matches the PyTorch buffer `pe`)
# ---------------------------------------------------------------------------
def build_fixed_positional_encoding(d_model, max_len=1024, scale_factor=1.0,
                                    dtype=jnp.float32):
    """pe[pos, 2i] = sin(pos / 10000^(2i/d_model)); pe[pos, 2i+1] = cos(...),
    scaled by scale_factor.  The PyTorch module stores it as [max_len, 1, d_model];
    the singleton batch dim is kept implicit here and broadcast inside the kernel."""
    assert d_model % 2 == 0, "d_model must be even (same restriction as the reference)"
    position = jnp.arange(max_len, dtype=jnp.float32)[:, None]               # [L, 1]
    div_term = jnp.exp(jnp.arange(0, d_model, 2, dtype=jnp.float32)
                       * (-math.log(10000.0) / d_model))                     # [D/2]
    angles = position * div_term                                             # [L, D/2]
    pe = jnp.zeros((max_len, d_model), jnp.float32)
    pe = pe.at[:, 0::2].set(jnp.sin(angles))
    pe = pe.at[:, 1::2].set(jnp.cos(angles))
    return (scale_factor * pe).astype(dtype)


# ---------------------------------------------------------------------------
# Kernels
# ---------------------------------------------------------------------------
def _pe_add_3d_kernel(x_ref, pe_ref, o_ref):
    # x: [TS, B, D]  (batch -> sublanes, D -> lanes, both already dense)
    # pe: [TS, D]    -> broadcast over batch
    o_ref[...] = x_ref[...] + pe_ref[...][:, None, :]


def _pe_add_2d_kernel(x_ref, pe_ref, o_ref, *, batch):
    # x: [TS, B*D]  (lane-dense slab)
    # pe: [TS, D]   -> replicated across batch along lanes in-VMEM (cheap vs DMA)
    pe = pe_ref[...]
    if batch > 1:
        pe = jnp.tile(pe, (1, batch))
    o_ref[...] = x_ref[...] + pe


# ---------------------------------------------------------------------------
# Tiling heuristic
# ---------------------------------------------------------------------------
def _choose_seq_tile(S, row_bytes, target_bytes=3 << 20):
    """Largest 8-aligned sequence tile with an x-block of ~target_bytes, and at
    least 2 grid steps when the sequence is long enough (v7x megacore bandwidth)."""
    tile = max(1, target_bytes // max(row_bytes, 1))
    if S >= 16:
        tile = min(tile, S // 2)        # >= 2 grid steps for this mem-bound kernel
    if tile >= S:
        return S                        # full-extent block dim is always legal
    return max(8, (tile // 8) * 8)      # blocked sublane dim must be 8-aligned


# ---------------------------------------------------------------------------
# Wrapper
# ---------------------------------------------------------------------------
def fixed_positional_encoding(x, pe, *, seq_tile=None):
    """x: [S, B, D] (seq, batch, embed); pe: [max_len, D] with max_len >= S.
    Returns x + pe[:S] broadcast over batch (eval-mode forward of the module)."""
    # TODO(synk): training-mode dropout (p=0.1) not reproduced (eval-mode identity).
    S, B, D = x.shape
    assert pe.shape[0] >= S and pe.shape[1] == D

    itemsize = jnp.dtype(x.dtype).itemsize
    if seq_tile is None:
        seq_tile = _choose_seq_tile(S, B * D * itemsize)
    grid_steps = pl.cdiv(S, seq_tile)

    # Add in x.dtype (bf16 pe when x is bf16: halves pe DMA bytes, no per-tile cast).
    # If bit-exact f32 pe parity is required with low-precision x, add in f32 instead.
    pe_use = pe[:S].astype(x.dtype)
    padded_s = grid_steps * seq_tile
    if padded_s > S:
        # Keep the edge tile's pe block read fully in bounds.
        pe_use = jnp.pad(pe_use, ((0, padded_s - S), (0, 0)))

    pe_spec = pl.BlockSpec((seq_tile, D), lambda i: (i, 0))
    params = pltpu.CompilerParams(dimension_semantics=("parallel",))

    if B >= 8 and D % 128 == 0:
        # Natural 3-D layout is already vreg-dense: no padding, no masked stores.
        return pl.pallas_call(
            _pe_add_3d_kernel,
            out_shape=jax.ShapeDtypeStruct((S, B, D), x.dtype),
            grid=(grid_steps,),
            in_specs=[pl.BlockSpec((seq_tile, B, D), lambda i: (i, 0, 0)), pe_spec],
            out_specs=pl.BlockSpec((seq_tile, B, D), lambda i: (i, 0, 0)),
            compiler_params=params,
        )(x, pe_use)

    # Lane-dense path for small B / non-128-multiple D: fold batch into lanes so
    # stores are unmasked full-lane vst's; pe stays [*, D] in HBM (no extra bytes).
    x2 = x.reshape(S, B * D)                      # free contiguous reshape
    out2 = pl.pallas_call(
        functools.partial(_pe_add_2d_kernel, batch=B),
        out_shape=jax.ShapeDtypeStruct((S, B * D), x.dtype),
        grid=(grid_steps,),
        in_specs=[pl.BlockSpec((seq_tile, B * D), lambda i: (i, 0)), pe_spec],
        out_specs=pl.BlockSpec((seq_tile, B * D), lambda i: (i, 0)),
        compiler_params=params,
    )(x2, pe_use)
    return out2.reshape(S, B, D)


# ---------------------------------------------------------------------------
# Demo / self-check
# ---------------------------------------------------------------------------
if __name__ == "__main__":
    key = jax.random.PRNGKey(0)
    k1, k2 = jax.random.split(key)

    # Case 1: small batch / small d_model -> lane-dense 2-D path.
    SEQ, BATCH, D_MODEL, MAX_LEN = 8, 2, 32, 64
    x = jax.random.normal(k1, (SEQ, BATCH, D_MODEL), jnp.float32)   # [seq, batch, embed]
    pe = build_fixed_positional_encoding(D_MODEL, max_len=MAX_LEN, scale_factor=1.0)
    out = fixed_positional_encoding(x, pe)
    jax.block_until_ready(out)
    ref = x + pe[:SEQ][:, None, :]
    assert out.shape == (SEQ, BATCH, D_MODEL)
    assert jnp.allclose(out, ref, atol=1e-6, rtol=1e-6)

    # Case 2: B >= 8, D % 128 == 0 -> natural 3-D path with >= 2 grid steps.
    SEQ2, BATCH2, D2 = 16, 8, 128
    x2 = jax.random.normal(k2, (SEQ2, BATCH2, D2), jnp.float32)
    pe2 = build_fixed_positional_encoding(D2, max_len=32, scale_factor=1.0)
    out2 = fixed_positional_encoding(x2, pe2)
    jax.block_until_ready(out2)
    ref2 = x2 + pe2[:SEQ2][:, None, :]
    assert out2.shape == (SEQ2, BATCH2, D2)
    assert jnp.allclose(out2, ref2, atol=1e-6, rtol=1e-6)

    print("KERNEL_OK")
</pallas_src>

<mosaic_0001>
module attributes {stable_mosaic.version = 11 : i64} {
  func.func @_pe_add_2d_kernel(%arg0: i32, %arg1: memref<8x64xf32, #tpu.memory_space<vmem>>, %arg2: memref<8x32xf32, #tpu.memory_space<vmem>>, %arg3: memref<8x64xf32, #tpu.memory_space<vmem>>) attributes {dimension_semantics = [#tpu.dimension_semantics<parallel>], iteration_bounds = array<i64: 1>, scalar_prefetch = 0 : i64, scratch_operands = 0 : i64, tpu.core_type = #tpu.core_type<tc>, window_params = [{transform_indices = @transform_0, window_bounds = array<i64: 8, 64>}, {transform_indices = @transform_1, window_bounds = array<i64: 8, 32>}, {transform_indices = @transform_2, window_bounds = array<i64: 8, 64>}]} {
    %c0 = arith.constant 0 : index
    %c0_0 = arith.constant 0 : index
    %0 = vector.load %arg2[%c0, %c0_0] : memref<8x32xf32, #tpu.memory_space<vmem>>, vector<8x32xf32>
    %1 = tpu.concatenate %0, %0 in 1 : vector<8x32xf32>, vector<8x32xf32> -> vector<8x64xf32>
    %c0_1 = arith.constant 0 : index
    %c0_2 = arith.constant 0 : index
    %2 = vector.load %arg1[%c0_1, %c0_2] : memref<8x64xf32, #tpu.memory_space<vmem>>, vector<8x64xf32>
    %3 = arith.addf %2, %1 : vector<8x64xf32>
    %c0_3 = arith.constant 0 : index
    %c0_4 = arith.constant 0 : index
    %4 = vector.load %arg3[%c0_3, %c0_4] : memref<8x64xf32, #tpu.memory_space<vmem>>, vector<8x64xf32>
    tpu.vector_store %arg3[%c0_3, %c0_4], %3 {strides = array<i32>} : memref<8x64xf32, #tpu.memory_space<vmem>>, vector<8x64xf32>,
    return
  }
  func.func @transform_0(%arg0: i32) -> (i32, i32) {
    %c0_i32 = arith.constant 0 : i32
    %c0_i32_0 = arith.constant 0 : i32
    return %arg0, %c0_i32 : i32, i32
  }
  func.func @transform_1(%arg0: i32) -> (i32, i32) {
    %c0_i32 = arith.constant 0 : i32
    %c0_i32_0 = arith.constant 0 : i32
    return %arg0, %c0_i32 : i32, i32
  }
  func.func @transform_2(%arg0: i32) -> (i32, i32) {
    %c0_i32 = arith.constant 0 : i32
    %c0_i32_0 = arith.constant 0 : i32
    return %arg0, %c0_i32 : i32, i32
  }
}

</mosaic_0001>

<bundles_post_ra>
// kernel: tpu_custom_call.1
= control target key start
LH: loop header
LB: loop body
LE: loop exit
PB: predicated region body
PF: predicated region fallthrough
CT: control target
= control target key end

     0   :  { %7 = vsyncpa [#allocation3], 0  ;;  %s179_s0 = inlined_call_operand.hbm [shape: f32[8,64], index: 0, kind: input, shape index: {}]   ;;  %s180_s1 = inlined_call_operand.hbm [shape: f32[8,32], index: 1, kind: input, shape index: {}]   ;;  %s181_s2 = inlined_call_operand.hbm [shape: f32[8,64], index: 2, kind: output, shape index: {}]  }
   0x1   :  { %8 = vsyncpa [#allocation6], 0 }
   0x2   :  { %9 = vsyncpa [#allocation4], 0  ;;  %s15_s11 = sshll.u32 %s179_s0, 4  ;;  %s151_s12 = smov [#allocation2]   ;;  %s16_s11 = int_to_ptr.hbm [resolvable:$true] %s15_s11 }
   0x3   :  { %s17_s13 = sshll.u32 %s151_s12, 4  ;;  %s26_s16 = sshll.u32 %s180_s1, 4  ;;  %s18_s13 = int_to_ptr.vmem [resolvable:$true] %s17_s13  ;;  %s27_s16 = int_to_ptr.hbm [resolvable:$true] %s26_s16 }
   0x4   :  { %20 = dma.hbm_to_vmem [thread:$0]  %s16_s11, 128, %s18_s13, [#allocation3]  }
   0x5   :  { %s152_s17 = smov [#allocation5]  }
   0x6   :  { %s28_s18 = sshll.u32 %s152_s17, 4  ;;  %s29_s18 = int_to_ptr.vmem [resolvable:$true] %s28_s18 }
   0x7   :  { %31 = dma.hbm_to_vmem [thread:$0]  %s27_s16, 128, %s29_s18, [#allocation6]  }
   0x8   :  { %145 = dma.done.wait [#allocation3], 128  }
   0x9   :  { %146 = vsyncadd [#allocation3], 4294967168 }
   0xa   :  { %147 = dma.done.wait [#allocation6], 128  }
   0xb   :  { %148 = vsyncadd [#allocation6], 4294967168  ;;  %v40_v0 = vld [vmem:[#allocation5] sm:$0xff]  ;;  %s153_s0 = smov 32   ;;  %vm45_vm0 = vcmask 261120   ;;  %v47_v1 = vld [vmem:[#allocation2] sm:$0xff] }
   0xc   :  { %42 = vrot.lane.b32.xlu0 %v40_v0, %s153_s0  ;;  %s154_s19 = smov [#allocation7]   ;;  %s58_s1 = sshll.u32 %s181_s2, 4  ;;  %vm49_vm1 = vcmask 523264   ;;  %s59_s1 = int_to_ptr.hbm [resolvable:$true] %s58_s1 }
   0xd   :  { %s56_s20 = sshll.u32 %s154_s19, 4  ;;  %s57_s20 = int_to_ptr.vmem [resolvable:$true] %s56_s20 }
  0x7e   :  { %v43_v2 = vpop.permute.xlu0 %42 }
  0x7f   :  { %v46_v3 = vsel %vm45_vm0, %v40_v0, %v43_v2 }
  0x80   :  { %v48_v4 = vadd.f32 %v47_v1, %v46_v3 }
  0x82   :  { %50 = vst.msk [vmem:[#allocation7] sm:$0xff] %vm49_vm1, %v48_v4 }
  0x83   :  { %61 = dma.vmem_to_hbm [thread:$0]  %s57_s20, 128, %s59_s1, [#allocation4]  }
  0x84   :  { %149 = dma.done.wait [#allocation4], 128  }
  0x85   :  { %150 = vsyncadd [#allocation4], 4294967168 }
  0x86   :  { %66 = vsyncpa [#allocation3], 1 }
  0x87   :  { %67 = vsyncpa [#allocation6], 1 }
  0x88   :  { %68 = vsyncpa [#allocation4], 1 }

</bundles_post_ra>
